<compile_context>
chip_gen: v5e
topology: v5e:2x2
jax: 0.10.0
libtpu: 0.0.40
codegen_flags: <defaults>
</compile_context>

<pallas_src>
import functools

import jax
import jax.numpy as jnp
from jax import lax
from jax.experimental import pallas as pl
from jax.experimental.pallas import tpu as pltpu

LANE = 128
_EPS = 1e-8  # matches torch.nn.functional.cosine_similarity eps (per-norm clamp)


# ---------------------------------------------------------------------------
# Pallas kernel: per-seed lane-partials of (t·v1, v0·v1, ||v1||^2)
# ---------------------------------------------------------------------------
def _stats_kernel(t_ref, v0_ref, v1_ref, o_ref, *, s_blk, nbc, n_chunks,
                  seed_unroll, chunk_unroll):
    """t_ref  : VMEM (B, NB, 128)          target latents (resident, f32)
       v0_ref : VMEM (B, NB, 128)          target initial latents (resident, f32)
       v1_ref : VMEM (s_blk, B, NB, 128)   per-seed initial latents (streamed, native dtype)
       o_ref  : VMEM (s_blk, 3, B, 128)    lane-partials: [t·v1, v0·v1, v1·v1]
    The lane (128) reduction is deferred to the JAX epilogue; the NB axis is
    reduced here NB-first (VALU adds across vregs, one small cross-sublane
    reduce per seed/stat) to keep the XLU slot off the critical path.
    """
    b = t_ref.shape[0]

    def seed_body(k, carry):
        zero = jnp.zeros((b, nbc, LANE), jnp.float32)

        def chunk_body(c, accs):
            at, a0, av = accs
            off = pl.multiple_of(c * nbc, nbc)
            sl = pl.ds(off, nbc)
            v1c = v1_ref[k, :, sl, :].astype(jnp.float32)   # upcast per tile
            tc = t_ref[:, sl, :]
            v0c = v0_ref[:, sl, :]
            return (at + tc * v1c, a0 + v0c * v1c, av + v1c * v1c)

        at, a0, av = lax.fori_loop(0, n_chunks, chunk_body, (zero, zero, zero),
                                   unroll=chunk_unroll)
        # one small cross-sublane reduce per stat per seed (not per vreg)
        o_ref[k, 0] = jnp.sum(at, axis=1)
        o_ref[k, 1] = jnp.sum(a0, axis=1)
        o_ref[k, 2] = jnp.sum(av, axis=1)
        return carry

    lax.fori_loop(0, s_blk, seed_body, 0, unroll=seed_unroll)


def _pick_seed_block(num_seeds, per_seed_bytes):
    """Seeds per grid step, sized so the double-buffered seed stream fills a
    generation-aware VMEM budget (v7x has 64 MiB VMEM, v5e/v6e have 128 MiB)."""
    try:
        vmem_cap = pltpu.get_tpu_info().vmem_capacity_bytes
    except Exception:
        vmem_cap = 64 << 20  # conservative (v7x-sized) fallback
    budget = (16 << 20) if vmem_cap >= (100 << 20) else (8 << 20)
    s_blk = max(1, budget // max(int(per_seed_bytes), 1))
    return int(min(s_blk, num_seeds))


def fused_slerp_cosine_score(target_latents, target_init_latents,
                             init_latents_per_seed, val):
    """sum_j 10000 * cos_sim(target, slerp(target_init, init_j, val)) per row.

    target_latents:        [B, C, H, W]
    target_init_latents:   [B, C, H, W]
    init_latents_per_seed: [S, B, C, H, W]
    returns:               [B] float32
    """
    S = init_latents_per_seed.shape[0]
    B = target_latents.shape[0]
    N = int(target_latents.size) // B

    # ---- small seed-invariant quantities (cheap, plain JAX) ----
    t_flat = target_latents.reshape(B, N).astype(jnp.float32)
    v0_flat = target_init_latents.reshape(B, N).astype(jnp.float32)
    t_norm = jnp.linalg.norm(t_flat, axis=-1)                 # (B,)
    tv0_row = jnp.sum(t_flat * v0_flat, axis=-1)              # (B,)  t·v0 per row
    v0sq_row = jnp.sum(v0_flat * v0_flat, axis=-1)            # (B,)  ||v0||^2 per row
    n0 = jnp.sqrt(jnp.sum(v0sq_row))                          # whole-tensor ||v0||

    # ---- lane layout [.., N/128, 128]; no copy of the big tensor if aligned ----
    n_pad = ((N + LANE - 1) // LANE) * LANE
    v1 = init_latents_per_seed.reshape(S, B, N)                # native dtype, no astype
    if n_pad != N:
        # TODO(synk): only hit when the flattened latent size is not a multiple
        # of 128 (standard SD latents are); this pad copies the seed tensor once.
        t_flat = jnp.pad(t_flat, [(0, 0), (0, n_pad - N)])
        v0_flat = jnp.pad(v0_flat, [(0, 0), (0, n_pad - N)])
        v1 = jnp.pad(v1, [(0, 0), (0, 0), (0, n_pad - N)])
    nb = n_pad // LANE
    t_r = t_flat.reshape(B, nb, LANE)
    v0_r = v0_flat.reshape(B, nb, LANE)
    v1_r = v1.reshape(S, B, nb, LANE)

    # ---- seed blocking (no artificial cap); tail handled by a partial block ----
    per_seed_bytes = B * n_pad * jnp.dtype(v1_r.dtype).itemsize
    s_blk = _pick_seed_block(S, per_seed_bytes)
    n_j = (S + s_blk - 1) // s_blk

    # ---- NB (sublane) chunking: bound live vregs at large N ----
    nbc = min(nb, 8)
    while nb % nbc:
        nbc -= 1
    n_chunks = nb // nbc
    chunk_unroll = min(n_chunks, 8)
    seed_unroll = min(s_blk, 4)

    v1_block_bytes = s_blk * B * n_pad * jnp.dtype(v1_r.dtype).itemsize
    resident_bytes = 2 * B * n_pad * 4                        # t + v0 (f32)
    out_block_bytes = s_blk * 3 * B * LANE * 4
    vmem_limit = int(max(32 << 20,
                         2 * v1_block_bytes + 2 * resident_bytes
                         + 2 * out_block_bytes + (8 << 20)))

    kernel = functools.partial(_stats_kernel, s_blk=s_blk, nbc=nbc,
                               n_chunks=n_chunks, seed_unroll=seed_unroll,
                               chunk_unroll=chunk_unroll)

    stats = pl.pallas_call(
        kernel,
        out_shape=jax.ShapeDtypeStruct((n_j * s_blk, 3, B, LANE), jnp.float32),
        grid_spec=pltpu.PrefetchScalarGridSpec(
            num_scalar_prefetch=0,
            grid=(n_j,),
            in_specs=[
                # resident (constant index_map across the grid)
                pl.BlockSpec((B, nb, LANE), lambda j: (0, 0, 0)),
                pl.BlockSpec((B, nb, LANE), lambda j: (0, 0, 0)),
                # streamed seed block (only HBM read of the big tensor)
                pl.BlockSpec((s_blk, B, nb, LANE), lambda j: (j, 0, 0, 0)),
            ],
            out_specs=pl.BlockSpec((s_blk, 3, B, LANE), lambda j: (j, 0, 0, 0)),
        ),
        compiler_params=pltpu.CompilerParams(
            dimension_semantics=("parallel",),
            vmem_limit_bytes=vmem_limit,
        ),
    )(t_r, v0_r, v1_r)

    # ---- tiny O(S*B) epilogue: lane reduce, slerp coefficients, cosine ----
    # TODO(synk): PyTorch computes the cosine similarity in float64; TPU has no
    # f64 vector support, so the reduction is done in float32 instead.
    stats = stats[:S]                         # drop tail-padding seed rows
    part = jnp.sum(stats, axis=-1)            # (S, 3, B)  deferred cross-lane reduce
    tv1, v0v1, v1v1 = part[:, 0], part[:, 1], part[:, 2]      # each (S, B)

    dot_all = jnp.sum(v0v1, axis=-1)                          # (S,) whole-tensor v0·v1_j
    n1 = jnp.sqrt(jnp.sum(v1v1, axis=-1))                     # (S,) whole-tensor ||v1_j||
    d = jnp.clip(dot_all / jnp.maximum(n0 * n1, _EPS), -1.0, 1.0)
    theta = jnp.arccos(d)
    sin_t = jnp.sin(theta)
    safe = sin_t > 1e-6                                       # lerp fallback for theta ~ 0
    a = jnp.where(safe, jnp.sin((1.0 - val) * theta) / jnp.where(safe, sin_t, 1.0),
                  1.0 - val)
    b = jnp.where(safe, jnp.sin(val * theta) / jnp.where(safe, sin_t, 1.0), val)
    a = a[:, None]
    b = b[:, None]

    # lat_j = a*v0 + b*v1_j  ->  per-row dot and norm recovered from partials
    num = a * tv0_row[None, :] + b * tv1                      # (S, B)  t · lat_j
    latsq = a * a * v0sq_row[None, :] + 2.0 * a * b * v0v1 + b * b * v1v1
    lat_norm = jnp.sqrt(jnp.maximum(latsq, 0.0))
    score = 10000.0 * num / (jnp.maximum(t_norm[None, :], _EPS)
                             * jnp.maximum(lat_norm, _EPS))
    return jnp.sum(score, axis=0)                             # (B,)


# ---------------------------------------------------------------------------
# Plain-JAX glue mirroring the module (no heavy compute here)
# ---------------------------------------------------------------------------
def get_text_embedding(condition_row, condition_param, uncondition):
    """Mirrors GradientDescent.get_text_embedding (glue only)."""
    cond_rep = jnp.tile(condition_param[:, None, :], (1, 76, 1))             # (1, 76, H)
    cond = jnp.concatenate([condition_row[:, None, :], cond_rep], axis=1)    # (1, 77, H)
    return jnp.concatenate([uncondition, cond], axis=0)                      # (2, 77, H)


def gradient_descent_forward(target_latents, target_init_latents,
                             init_latents_per_seed, condition, uncondition, val):
    """Forward: sum of 10000*cos_sim(target, latents_j) over the seed batch."""
    condition_row = condition[:, 0, :]
    condition_param = condition[:, -1, :]
    _text_emb = get_text_embedding(condition_row, condition_param, uncondition)
    # TODO(synk): ldm.embedding_2_img (full diffusion denoising with _text_emb) and
    # ldm.text_enc have no Pallas equivalent; the per-seed latents come from the
    # fused slerp surrogate inside fused_slerp_cosine_score.
    return fused_slerp_cosine_score(target_latents, target_init_latents,
                                    init_latents_per_seed, val)


# ---------------------------------------------------------------------------
if __name__ == "__main__":
    key = jax.random.PRNGKey(0)
    k1, k2, k3, k4, k5 = jax.random.split(key, 5)

    # Small, shape-consistent synthetic setup.
    B, C, H, W = 2, 4, 16, 16       # latents (NCHW)
    S = 3                           # seed batch size
    SEQ, HID = 77, 32               # text-embedding seq length / hidden dim
    val = 0.7

    target_latents = jax.random.normal(k1, (B, C, H, W), dtype=jnp.float32)
    target_init_latents = jax.random.normal(k2, (B, C, H, W), dtype=jnp.float32)
    init_latents_per_seed = jax.random.normal(k3, (S, B, C, H, W), dtype=jnp.float32)
    condition = jax.random.normal(k4, (1, SEQ, HID), dtype=jnp.float32)
    uncondition = jax.random.normal(k5, (1, SEQ, HID), dtype=jnp.float32)

    fwd = jax.jit(gradient_descent_forward)
    score = jax.block_until_ready(
        fwd(target_latents, target_init_latents, init_latents_per_seed,
            condition, uncondition, val))

    # Pure-JAX reference: explicit slerp per seed, then torch-style cosine sim.
    def slerp_ref(v0, v1, t):
        v0f = v0.reshape(-1)
        v1f = v1.reshape(-1)
        d = jnp.clip(jnp.dot(v0f, v1f)
                     / jnp.maximum(jnp.linalg.norm(v0f) * jnp.linalg.norm(v1f), 1e-8),
                     -1.0, 1.0)
        theta = jnp.arccos(d)
        s = jnp.sin(theta)
        safe = s > 1e-6
        aa = jnp.where(safe, jnp.sin((1.0 - t) * theta) / jnp.where(safe, s, 1.0), 1.0 - t)
        bb = jnp.where(safe, jnp.sin(t * theta) / jnp.where(safe, s, 1.0), t)
        return aa * v0 + bb * v1

    def ref_score():
        tf = target_latents.reshape(B, -1).astype(jnp.float32)
        nt = jnp.maximum(jnp.linalg.norm(tf, axis=-1), 1e-8)
        acc = jnp.zeros((B,), jnp.float32)
        for j in range(S):
            lj = slerp_ref(target_init_latents, init_latents_per_seed[j], val)
            lf = lj.reshape(B, -1).astype(jnp.float32)
            nl = jnp.maximum(jnp.linalg.norm(lf, axis=-1), 1e-8)
            acc = acc + 10000.0 * jnp.sum(tf * lf, axis=-1) / (nt * nl)
        return acc

    ref = jax.block_until_ready(ref_score())
    assert jnp.allclose(score, ref, rtol=1e-4, atol=5e-2), (score, ref)
    print("KERNEL_OK")
</pallas_src>

<mosaic_0001>
module attributes {stable_mosaic.version = 11 : i64} {
  func.func @_stats_kernel(%arg0: i32, %arg1: memref<2x8x128xf32, #tpu.memory_space<vmem>>, %arg2: memref<2x8x128xf32, #tpu.memory_space<vmem>>, %arg3: memref<3x2x8x128xf32, #tpu.memory_space<vmem>>, %arg4: memref<3x3x2x128xf32, #tpu.memory_space<vmem>>) attributes {dimension_semantics = [#tpu.dimension_semantics<parallel>], iteration_bounds = array<i64: 1>, scalar_prefetch = 0 : i64, scratch_operands = 0 : i64, tpu.core_type = #tpu.core_type<tc>, window_params = [{pipeline_mode = #tpu.pipeline_mode<synchronous>, transform_indices = @transform_0, window_bounds = array<i64: 2, 8, 128>}, {pipeline_mode = #tpu.pipeline_mode<synchronous>, transform_indices = @transform_1, window_bounds = array<i64: 2, 8, 128>}, {transform_indices = @transform_2, window_bounds = array<i64: 3, 2, 8, 128>}, {transform_indices = @transform_3, window_bounds = array<i64: 3, 3, 2, 128>}]} {
    %c0_i32 = arith.constant 0 : i32
    %cst = arith.constant 0.000000e+00 : f32
    %0 = vector.broadcast %cst : f32 to vector<2x8x128xf32>
    %c0_i32_0 = arith.constant 0 : i32
    %c8_i32 = arith.constant 8 : i32
    %1 = arith.muli %c0_i32_0, %c8_i32 : i32
    %2 = tpu.assume_multiple %1, 8 : i32
    %3 = arith.index_cast %c0_i32 : i32 to index
    %c0 = arith.constant 0 : index
    %4 = arith.index_cast %2 : i32 to index
    %c0_1 = arith.constant 0 : index
    %5 = vector.load %arg3[%3, %c0, %4, %c0_1] : memref<3x2x8x128xf32, #tpu.memory_space<vmem>>, vector<1x2x8x128xf32>
    %6 = vector.shape_cast %5 : vector<1x2x8x128xf32> to vector<2x8x128xf32>
    %c0_2 = arith.constant 0 : index
    %7 = arith.index_cast %2 : i32 to index
    %c0_3 = arith.constant 0 : index
    %8 = vector.load %arg1[%c0_2, %7, %c0_3] : memref<2x8x128xf32, #tpu.memory_space<vmem>>, vector<2x8x128xf32>
    %c0_4 = arith.constant 0 : index
    %9 = arith.index_cast %2 : i32 to index
    %c0_5 = arith.constant 0 : index
    %10 = vector.load %arg2[%c0_4, %9, %c0_5] : memref<2x8x128xf32, #tpu.memory_space<vmem>>, vector<2x8x128xf32>
    %11 = arith.mulf %8, %6 : vector<2x8x128xf32>
    %12 = arith.addf %0, %11 : vector<2x8x128xf32>
    %13 = arith.mulf %10, %6 : vector<2x8x128xf32>
    %14 = arith.addf %0, %13 : vector<2x8x128xf32>
    %15 = arith.mulf %6, %6 : vector<2x8x128xf32>
    %16 = arith.addf %0, %15 : vector<2x8x128xf32>
    %c1_i32 = arith.constant 1 : i32
    %cst_6 = arith.constant dense<0.000000e+00> : vector<2x128xf32>
    %17 = vector.multi_reduction <add>, %12, %cst_6 [1] : vector<2x8x128xf32> to vector<2x128xf32>
    %18 = arith.index_cast %c0_i32 : i32 to index
    %c0_7 = arith.constant 0 : index
    %c0_8 = arith.constant 0 : index
    %c0_9 = arith.constant 0 : index
    %19 = vector.load %arg4[%18, %c0_7, %c0_8, %c0_9] : memref<3x3x2x128xf32, #tpu.memory_space<vmem>>, vector<1x1x2x128xf32>
    %20 = vector.shape_cast %19 : vector<1x1x2x128xf32> to vector<2x128xf32>
    %21 = vector.shape_cast %17 : vector<2x128xf32> to vector<1x1x2x128xf32>
    tpu.vector_store %arg4[%18, %c0_7, %c0_8, %c0_9], %21 {strides = array<i32>} : memref<3x3x2x128xf32, #tpu.memory_space<vmem>>, vector<1x1x2x128xf32>,
    %cst_10 = arith.constant dense<0.000000e+00> : vector<2x128xf32>
    %22 = vector.multi_reduction <add>, %14, %cst_10 [1] : vector<2x8x128xf32> to vector<2x128xf32>
    %23 = arith.index_cast %c0_i32 : i32 to index
    %c1 = arith.constant 1 : index
    %c0_11 = arith.constant 0 : index
    %c0_12 = arith.constant 0 : index
    %24 = vector.load %arg4[%23, %c1, %c0_11, %c0_12] : memref<3x3x2x128xf32, #tpu.memory_space<vmem>>, vector<1x1x2x128xf32>
    %25 = vector.shape_cast %24 : vector<1x1x2x128xf32> to vector<2x128xf32>
    %26 = vector.shape_cast %22 : vector<2x128xf32> to vector<1x1x2x128xf32>
    tpu.vector_store %arg4[%23, %c1, %c0_11, %c0_12], %26 {strides = array<i32>} : memref<3x3x2x128xf32, #tpu.memory_space<vmem>>, vector<1x1x2x128xf32>,
    %cst_13 = arith.constant dense<0.000000e+00> : vector<2x128xf32>
    %27 = vector.multi_reduction <add>, %16, %cst_13 [1] : vector<2x8x128xf32> to vector<2x128xf32>
    %28 = arith.index_cast %c0_i32 : i32 to index
    %c2 = arith.constant 2 : index
    %c0_14 = arith.constant 0 : index
    %c0_15 = arith.constant 0 : index
    %29 = vector.load %arg4[%28, %c2, %c0_14, %c0_15] : memref<3x3x2x128xf32, #tpu.memory_space<vmem>>, vector<1x1x2x128xf32>
    %30 = vector.shape_cast %29 : vector<1x1x2x128xf32> to vector<2x128xf32>
    %31 = vector.shape_cast %27 : vector<2x128xf32> to vector<1x1x2x128xf32>
    tpu.vector_store %arg4[%28, %c2, %c0_14, %c0_15], %31 {strides = array<i32>} : memref<3x3x2x128xf32, #tpu.memory_space<vmem>>, vector<1x1x2x128xf32>,
    %c1_i32_16 = arith.constant 1 : i32
    %cst_17 = arith.constant 0.000000e+00 : f32
    %32 = vector.broadcast %cst_17 : f32 to vector<2x8x128xf32>
    %c0_i32_18 = arith.constant 0 : i32
    %c8_i32_19 = arith.constant 8 : i32
    %33 = arith.muli %c0_i32_18, %c8_i32_19 : i32
    %34 = tpu.assume_multiple %33, 8 : i32
    %35 = arith.index_cast %c1_i32_16 : i32 to index
    %c0_20 = arith.constant 0 : index
    %36 = arith.index_cast %34 : i32 to index
    %c0_21 = arith.constant 0 : index
    %37 = vector.load %arg3[%35, %c0_20, %36, %c0_21] : memref<3x2x8x128xf32, #tpu.memory_space<vmem>>, vector<1x2x8x128xf32>
    %38 = vector.shape_cast %37 : vector<1x2x8x128xf32> to vector<2x8x128xf32>
    %c0_22 = arith.constant 0 : index
    %39 = arith.index_cast %34 : i32 to index
    %c0_23 = arith.constant 0 : index
    %40 = vector.load %arg1[%c0_22, %39, %c0_23] : memref<2x8x128xf32, #tpu.memory_space<vmem>>, vector<2x8x128xf32>
    %c0_24 = arith.constant 0 : index
    %41 = arith.index_cast %34 : i32 to index
    %c0_25 = arith.constant 0 : index
    %42 = vector.load %arg2[%c0_24, %41, %c0_25] : memref<2x8x128xf32, #tpu.memory_space<vmem>>, vector<2x8x128xf32>
    %43 = arith.mulf %40, %38 : vector<2x8x128xf32>
    %44 = arith.addf %32, %43 : vector<2x8x128xf32>
    %45 = arith.mulf %42, %38 : vector<2x8x128xf32>
    %46 = arith.addf %32, %45 : vector<2x8x128xf32>
    %47 = arith.mulf %38, %38 : vector<2x8x128xf32>
    %48 = arith.addf %32, %47 : vector<2x8x128xf32>
    %c1_i32_26 = arith.constant 1 : i32
    %cst_27 = arith.constant dense<0.000000e+00> : vector<2x128xf32>
    %49 = vector.multi_reduction <add>, %44, %cst_27 [1] : vector<2x8x128xf32> to vector<2x128xf32>
    %50 = arith.index_cast %c1_i32_16 : i32 to index
    %c0_28 = arith.constant 0 : index
    %c0_29 = arith.constant 0 : index
    %c0_30 = arith.constant 0 : index
    %51 = vector.load %arg4[%50, %c0_28, %c0_29, %c0_30] : memref<3x3x2x128xf32, #tpu.memory_space<vmem>>, vector<1x1x2x128xf32>
    %52 = vector.shape_cast %51 : vector<1x1x2x128xf32> to vector<2x128xf32>
    %53 = vector.shape_cast %49 : vector<2x128xf32> to vector<1x1x2x128xf32>
    tpu.vector_store %arg4[%50, %c0_28, %c0_29, %c0_30], %53 {strides = array<i32>} : memref<3x3x2x128xf32, #tpu.memory_space<vmem>>, vector<1x1x2x128xf32>,
    %cst_31 = arith.constant dense<0.000000e+00> : vector<2x128xf32>
    %54 = vector.multi_reduction <add>, %46, %cst_31 [1] : vector<2x8x128xf32> to vector<2x128xf32>
    %55 = arith.index_cast %c1_i32_16 : i32 to index
    %c1_32 = arith.constant 1 : index
    %c0_33 = arith.constant 0 : index
    %c0_34 = arith.constant 0 : index
    %56 = vector.load %arg4[%55, %c1_32, %c0_33, %c0_34] : memref<3x3x2x128xf32, #tpu.memory_space<vmem>>, vector<1x1x2x128xf32>
    %57 = vector.shape_cast %56 : vector<1x1x2x128xf32> to vector<2x128xf32>
    %58 = vector.shape_cast %54 : vector<2x128xf32> to vector<1x1x2x128xf32>
    tpu.vector_store %arg4[%55, %c1_32, %c0_33, %c0_34], %58 {strides = array<i32>} : memref<3x3x2x128xf32, #tpu.memory_space<vmem>>, vector<1x1x2x128xf32>,
    %cst_35 = arith.constant dense<0.000000e+00> : vector<2x128xf32>
    %59 = vector.multi_reduction <add>, %48, %cst_35 [1] : vector<2x8x128xf32> to vector<2x128xf32>
    %60 = arith.index_cast %c1_i32_16 : i32 to index
    %c2_36 = arith.constant 2 : index
    %c0_37 = arith.constant 0 : index
    %c0_38 = arith.constant 0 : index
    %61 = vector.load %arg4[%60, %c2_36, %c0_37, %c0_38] : memref<3x3x2x128xf32, #tpu.memory_space<vmem>>, vector<1x1x2x128xf32>
    %62 = vector.shape_cast %61 : vector<1x1x2x128xf32> to vector<2x128xf32>
    %63 = vector.shape_cast %59 : vector<2x128xf32> to vector<1x1x2x128xf32>
    tpu.vector_store %arg4[%60, %c2_36, %c0_37, %c0_38], %63 {strides = array<i32>} : memref<3x3x2x128xf32, #tpu.memory_space<vmem>>, vector<1x1x2x128xf32>,
    %c2_i32 = arith.constant 2 : i32
    %cst_39 = arith.constant 0.000000e+00 : f32
    %64 = vector.broadcast %cst_39 : f32 to vector<2x8x128xf32>
    %c0_i32_40 = arith.constant 0 : i32
    %c8_i32_41 = arith.constant 8 : i32
    %65 = arith.muli %c0_i32_40, %c8_i32_41 : i32
    %66 = tpu.assume_multiple %65, 8 : i32
    %67 = arith.index_cast %c2_i32 : i32 to index
    %c0_42 = arith.constant 0 : index
    %68 = arith.index_cast %66 : i32 to index
    %c0_43 = arith.constant 0 : index
    %69 = vector.load %arg3[%67, %c0_42, %68, %c0_43] : memref<3x2x8x128xf32, #tpu.memory_space<vmem>>, vector<1x2x8x128xf32>
    %70 = vector.shape_cast %69 : vector<1x2x8x128xf32> to vector<2x8x128xf32>
    %c0_44 = arith.constant 0 : index
    %71 = arith.index_cast %66 : i32 to index
    %c0_45 = arith.constant 0 : index
    %72 = vector.load %arg1[%c0_44, %71, %c0_45] : memref<2x8x128xf32, #tpu.memory_space<vmem>>, vector<2x8x128xf32>
    %c0_46 = arith.constant 0 : index
    %73 = arith.index_cast %66 : i32 to index
    %c0_47 = arith.constant 0 : index
    %74 = vector.load %arg2[%c0_46, %73, %c0_47] : memref<2x8x128xf32, #tpu.memory_space<vmem>>, vector<2x8x128xf32>
    %75 = arith.mulf %72, %70 : vector<2x8x128xf32>
    %76 = arith.addf %64, %75 : vector<2x8x128xf32>
    %77 = arith.mulf %74, %70 : vector<2x8x128xf32>
    %78 = arith.addf %64, %77 : vector<2x8x128xf32>
    %79 = arith.mulf %70, %70 : vector<2x8x128xf32>
    %80 = arith.addf %64, %79 : vector<2x8x128xf32>
    %c1_i32_48 = arith.constant 1 : i32
    %cst_49 = arith.constant dense<0.000000e+00> : vector<2x128xf32>
    %81 = vector.multi_reduction <add>, %76, %cst_49 [1] : vector<2x8x128xf32> to vector<2x128xf32>
    %82 = arith.index_cast %c2_i32 : i32 to index
    %c0_50 = arith.constant 0 : index
    %c0_51 = arith.constant 0 : index
    %c0_52 = arith.constant 0 : index
    %83 = vector.load %arg4[%82, %c0_50, %c0_51, %c0_52] : memref<3x3x2x128xf32, #tpu.memory_space<vmem>>, vector<1x1x2x128xf32>
    %84 = vector.shape_cast %83 : vector<1x1x2x128xf32> to vector<2x128xf32>
    %85 = vector.shape_cast %81 : vector<2x128xf32> to vector<1x1x2x128xf32>
    tpu.vector_store %arg4[%82, %c0_50, %c0_51, %c0_52], %85 {strides = array<i32>} : memref<3x3x2x128xf32, #tpu.memory_space<vmem>>, vector<1x1x2x128xf32>,
    %cst_53 = arith.constant dense<0.000000e+00> : vector<2x128xf32>
    %86 = vector.multi_reduction <add>, %78, %cst_53 [1] : vector<2x8x128xf32> to vector<2x128xf32>
    %87 = arith.index_cast %c2_i32 : i32 to index
    %c1_54 = arith.constant 1 : index
    %c0_55 = arith.constant 0 : index
    %c0_56 = arith.constant 0 : index
    %88 = vector.load %arg4[%87, %c1_54, %c0_55, %c0_56] : memref<3x3x2x128xf32, #tpu.memory_space<vmem>>, vector<1x1x2x128xf32>
    %89 = vector.shape_cast %88 : vector<1x1x2x128xf32> to vector<2x128xf32>
    %90 = vector.shape_cast %86 : vector<2x128xf32> to vector<1x1x2x128xf32>
    tpu.vector_store %arg4[%87, %c1_54, %c0_55, %c0_56], %90 {strides = array<i32>} : memref<3x3x2x128xf32, #tpu.memory_space<vmem>>, vector<1x1x2x128xf32>,
    %cst_57 = arith.constant dense<0.000000e+00> : vector<2x128xf32>
    %91 = vector.multi_reduction <add>, %80, %cst_57 [1] : vector<2x8x128xf32> to vector<2x128xf32>
    %92 = arith.index_cast %c2_i32 : i32 to index
    %c2_58 = arith.constant 2 : index
    %c0_59 = arith.constant 0 : index
    %c0_60 = arith.constant 0 : index
    %93 = vector.load %arg4[%92, %c2_58, %c0_59, %c0_60] : memref<3x3x2x128xf32, #tpu.memory_space<vmem>>, vector<1x1x2x128xf32>
    %94 = vector.shape_cast %93 : vector<1x1x2x128xf32> to vector<2x128xf32>
    %95 = vector.shape_cast %91 : vector<2x128xf32> to vector<1x1x2x128xf32>
    tpu.vector_store %arg4[%92, %c2_58, %c0_59, %c0_60], %95 {strides = array<i32>} : memref<3x3x2x128xf32, #tpu.memory_space<vmem>>, vector<1x1x2x128xf32>,
    %c3_i32 = arith.constant 3 : i32
    return
  }
  func.func @transform_0(%arg0: i32) -> (i32, i32, i32) {
    %c0_i32 = arith.constant 0 : i32
    %c0_i32_0 = arith.constant 0 : i32
    %c0_i32_1 = arith.constant 0 : i32
    %c0_i32_2 = arith.constant 0 : i32
    return %c0_i32, %c0_i32_0, %c0_i32_1 : i32, i32, i32
  }
  func.func @transform_1(%arg0: i32) -> (i32, i32, i32) {
    %c0_i32 = arith.constant 0 : i32
    %c0_i32_0 = arith.constant 0 : i32
    %c0_i32_1 = arith.constant 0 : i32
    %c0_i32_2 = arith.constant 0 : i32
    return %c0_i32, %c0_i32_0, %c0_i32_1 : i32, i32, i32
  }
  func.func @transform_2(%arg0: i32) -> (i32, i32, i32, i32) {
    %c0_i32 = arith.constant 0 : i32
    %c0_i32_0 = arith.constant 0 : i32
    %c0_i32_1 = arith.constant 0 : i32
    %c0_i32_2 = arith.constant 0 : i32
    return %arg0, %c0_i32, %c0_i32_0, %c0_i32_1 : i32, i32, i32, i32
  }
  func.func @transform_3(%arg0: i32) -> (i32, i32, i32, i32) {
    %c0_i32 = arith.constant 0 : i32
    %c0_i32_0 = arith.constant 0 : i32
    %c0_i32_1 = arith.constant 0 : i32
    %c0_i32_2 = arith.constant 0 : i32
    return %arg0, %c0_i32, %c0_i32_0, %c0_i32_1 : i32, i32, i32, i32
  }
}

</mosaic_0001>

<bundles_post_ra>
// kernel: mul.24
= control target key start
LH: loop header
LB: loop body
LE: loop exit
PB: predicated region body
PF: predicated region fallthrough
CT: control target
= control target key end

     0   :  { %s34_s0 = inlined_call_operand.vmem [shape: f32[3], index: 0, kind: input, shape index: {}, may-alias: {0,1}]   ;;  %s35_s1 = inlined_call_operand.vmem [shape: f32[3], index: 1, kind: input, shape index: {}, may-alias: {0,1}]   ;;  %s36_s2 = inlined_call_operand.vmem [shape: f32[3], index: 2, kind: output, shape index: {}]  }
   0x1   :  { %v3_v0 = vld [vmem:[%s34_s0] sm:$0x1] }
   0x2   :  { %v4_v1 = vld [vmem:[%s35_s1] sm:$0x1] }
   0x3   :  { %v7_v2 = vmul.f32 %v4_v1, %v3_v0 }
   0x5   :  { %9 = vst [vmem:[%s36_s2] sm:$0x1] %v7_v2 }

// kernel: gradient_descent_forward.1
= control target key start
LH: loop header
LB: loop body
LE: loop exit
PB: predicated region body
PF: predicated region fallthrough
CT: control target
= control target key end

     0   :  { %vm46_vm0 = vcmask 1041409   ;;  %s376_s0 = inlined_call_operand.vmem [shape: f32[2,8,128], index: 0, kind: input, shape index: {}]   ;;  %s377_s2 = inlined_call_operand.vmem [shape: f32[3,2,8,128], index: 2, kind: input, shape index: {}]   ;;  %s378_s1 = inlined_call_operand.vmem [shape: f32[2,8,128], index: 1, kind: input, shape index: {}]   ;;  %s379_s3 = inlined_call_operand.vmem [shape: f32[3,3,2,128], index: 3, kind: output, shape index: {}]  }
   0x1   :  { %v14_v0 = vld [vmem:[%s377_s2] sm:$0xff]  ;;  %v15_v1 = vld [vmem:[%s377_s2 + $0x8] sm:$0xff]  ;;  %v242_v12 = vld [vmem:[%s377_s2 + $0x10] sm:$0xff] }
   0x2   :  { %v281_v2 = vld [vmem:[%s376_s0] sm:$0xff]  ;;  %v286_v3 = vld [vmem:[%s376_s0 + $0x8] sm:$0xff]  ;;  %v28_v7 = vmul.f32 %v14_v0, %v14_v0  ;;  %v29_v8 = vmul.f32 %v15_v1, %v15_v1  ;;  %v308_v13 = vld [vmem:[%s377_s2 + $0x18] sm:$0xff] }
   0x3   :  { %v20_v4 = vmul.f32 %v281_v2, %v14_v0  ;;  %v292_v5 = vld [vmem:[%s378_s1] sm:$0xff]  ;;  %v297_v6 = vld [vmem:[%s378_s1 + $0x8] sm:$0xff]  ;;  %v21_v9 = vmul.f32 %v286_v3, %v15_v1  ;;  %v94_v17 = vmul.f32 %v242_v12, %v281_v2  ;;  %v95_v21 = vmul.f32 %v308_v13, %v286_v3 }
   0x4   :  { %v24_v10 = vmul.f32 %v292_v5, %v14_v0  ;;  %v25_v11 = vmul.f32 %v297_v6, %v15_v1  ;;  %v68_v15 = vrot.slane %v28_v7, 4  ;;  %v74_v16 = vrot.slane %v29_v8, 4  ;;  %v316_v62 = vld [vmem:[%s377_s2 + $0x20] sm:$0xff] }
   0x5   :  { %v32_v14 = vrot.slane %v20_v4, 4  ;;  %v38_v18 = vrot.slane %v21_v9, 4  ;;  %v106_v25 = vrot.slane %v94_v17, 4  ;;  %v112_v29 = vrot.slane %v95_v21, 4 }
   0x6   :  { %v50_v19 = vrot.slane %v24_v10, 4  ;;  %v56_v20 = vrot.slane %v25_v11, 4  ;;  %v69_v23 = vadd.f32 %v68_v15, %v28_v7  ;;  %v75_v24 = vadd.f32 %v74_v16, %v29_v8  ;;  %v325_v7 = vld [vmem:[%s377_s2 + $0x28] sm:$0xff] }
   0x7   :  { %v33_v22 = vadd.f32 %v32_v14, %v20_v4  ;;  %v39_v26 = vadd.f32 %v38_v18, %v21_v9  ;;  %v107_v33 = vadd.f32 %v106_v25, %v94_v17  ;;  %v113_v37 = vadd.f32 %v112_v29, %v95_v21 }
   0x8   :  { %v51_v27 = vadd.f32 %v50_v19, %v24_v10  ;;  %v57_v28 = vadd.f32 %v56_v20, %v25_v11  ;;  %v70_v31 = vrot.slane %v69_v23, 2  ;;  %v76_v32 = vrot.slane %v75_v24, 2 }
   0x9   :  { %v34_v30 = vrot.slane %v33_v22, 2  ;;  %v40_v34 = vrot.slane %v39_v26, 2  ;;  %v108_v41 = vrot.slane %v107_v33, 2  ;;  %v114_v45 = vrot.slane %v113_v37, 2 }
   0xa   :  { %v52_v35 = vrot.slane %v51_v27, 2  ;;  %v58_v36 = vrot.slane %v57_v28, 2  ;;  %v71_v39 = vadd.f32 %v70_v31, %v69_v23  ;;  %v77_v40 = vadd.f32 %v76_v32, %v75_v24 }
   0xb   :  { %v35_v38 = vadd.f32 %v34_v30, %v33_v22  ;;  %v41_v42 = vadd.f32 %v40_v34, %v39_v26  ;;  %v109_v49 = vadd.f32 %v108_v41, %v107_v33  ;;  %v115_v53 = vadd.f32 %v114_v45, %v113_v37 }
   0xc   :  { %v53_v43 = vadd.f32 %v52_v35, %v51_v27  ;;  %v59_v44 = vadd.f32 %v58_v36, %v57_v28  ;;  %v72_v47 = vrot.slane %v71_v39, 1  ;;  %v78_v48 = vrot.slane %v77_v40, 1 }
   0xd   :  { %v36_v46 = vrot.slane %v35_v38, 1  ;;  %v42_v50 = vrot.slane %v41_v42, 1  ;;  %v110_v57 = vrot.slane %v109_v49, 1  ;;  %v116_v61 = vrot.slane %v115_v53, 1 }
   0xe   :  { %v54_v51 = vrot.slane %v53_v43, 1  ;;  %v60_v52 = vrot.slane %v59_v44, 1  ;;  %v73_v55 = vadd.f32 %v72_v47, %v71_v39  ;;  %v79_v56 = vadd.f32 %v78_v48, %v77_v40 }
   0xf   :  { %v37_v54 = vadd.f32 %v36_v46, %v35_v38  ;;  %v43_v58 = vadd.f32 %v42_v50, %v41_v42  ;;  %v111_v0 = vadd.f32 %v110_v57, %v109_v49  ;;  %v98_v1 = vmul.f32 %v242_v12, %v292_v5 }
  0x10   :  { %v55_v59 = vadd.f32 %v54_v51, %v53_v43  ;;  %v61_v60 = vadd.f32 %v60_v52, %v59_v44  ;;  %v82_v63 = vsel %vm46_vm0, %v79_v56, %v73_v55  ;;  %v99_v4 = vmul.f32 %v308_v13, %v297_v6 }
  0x11   :  { %v47_v8 = vsel %vm46_vm0, %v43_v58, %v37_v54  ;;  %241 = vst [vmem:[%s379_s3 + $0x4] sm:$0x3] %v82_v63  ;;  %v117_v10 = vadd.f32 %v116_v61, %v115_v53  ;;  %v102_v11 = vmul.f32 %v242_v12, %v242_v12  ;;  %v124_v14 = vrot.slane %v98_v1, 4 }
  0x12   :  { %v64_v9 = vsel %vm46_vm0, %v61_v60, %v55_v59  ;;  %49 = vst [vmem:[%s379_s3] sm:$0x3] %v47_v8  ;;  %v130_v15 = vrot.slane %v99_v4, 4  ;;  %v103_v16 = vmul.f32 %v308_v13, %v308_v13  ;;  %v168_v17 = vmul.f32 %v316_v62, %v281_v2 }
  0x13   :  { %240 = vst [vmem:[%s379_s3 + $0x2] sm:$0x3] %v64_v9  ;;  %v120_v18 = vsel %vm46_vm0, %v117_v10, %v111_v0  ;;  %v142_v19 = vrot.slane %v102_v11, 4  ;;  %v169_v12 = vmul.f32 %v325_v7, %v286_v3  ;;  %v172_v20 = vmul.f32 %v316_v62, %v292_v5 }
  0x14   :  { %244 = vst [vmem:[%s379_s3 + $0x6] sm:$0x3] %v120_v18  ;;  %v125_v13 = vadd.f32 %v124_v14, %v98_v1  ;;  %v131_v21 = vadd.f32 %v130_v15, %v99_v4  ;;  %v148_v2 = vrot.slane %v103_v16, 4  ;;  %v180_v22 = vrot.slane %v168_v17, 4 }
  0x15   :  { %v143_v23 = vadd.f32 %v142_v19, %v102_v11  ;;  %v186_v24 = vrot.slane %v169_v12, 4  ;;  %v173_v25 = vmul.f32 %v325_v7, %v297_v6  ;;  %v198_v26 = vrot.slane %v172_v20, 4 }
  0x16   :  { %v126_v27 = vrot.slane %v125_v13, 2  ;;  %v132_v28 = vrot.slane %v131_v21, 2  ;;  %v149_v3 = vadd.f32 %v148_v2, %v103_v16  ;;  %v181_v29 = vadd.f32 %v180_v22, %v168_v17 }
  0x17   :  { %v144_v30 = vrot.slane %v143_v23, 2  ;;  %v187_v5 = vadd.f32 %v186_v24, %v169_v12  ;;  %v199_v31 = vadd.f32 %v198_v26, %v172_v20  ;;  %v204_v32 = vrot.slane %v173_v25, 4 }
  0x18   :  { %v127_v33 = vadd.f32 %v126_v27, %v125_v13  ;;  %v133_v34 = vadd.f32 %v132_v28, %v131_v21  ;;  %v150_v35 = vrot.slane %v149_v3, 2  ;;  %v182_v36 = vrot.slane %v181_v29, 2 }
  0x19   :  { %v145_v37 = vadd.f32 %v144_v30, %v143_v23  ;;  %v188_v38 = vrot.slane %v187_v5, 2  ;;  %v200_v39 = vrot.slane %v199_v31, 2  ;;  %v205_v40 = vadd.f32 %v204_v32, %v173_v25 }
  0x1a   :  { %v128_v41 = vrot.slane %v127_v33, 1  ;;  %v134_v42 = vrot.slane %v133_v34, 1  ;;  %v151_v6 = vadd.f32 %v150_v35, %v149_v3  ;;  %v183_v43 = vadd.f32 %v182_v36, %v181_v29 }
  0x1b   :  { %v146_v44 = vrot.slane %v145_v37, 1  ;;  %v189_v45 = vadd.f32 %v188_v38, %v187_v5  ;;  %v201_v46 = vadd.f32 %v200_v39, %v199_v31  ;;  %v206_v47 = vrot.slane %v205_v40, 2 }
  0x1c   :  { %v129_v48 = vadd.f32 %v128_v41, %v127_v33  ;;  %v135_v49 = vadd.f32 %v134_v42, %v133_v34  ;;  %v152_v50 = vrot.slane %v151_v6, 1  ;;  %v184_v51 = vrot.slane %v183_v43, 1 }
  0x1d   :  { %v147_v52 = vadd.f32 %v146_v44, %v145_v37  ;;  %v190_v53 = vrot.slane %v189_v45, 1  ;;  %v202_v54 = vrot.slane %v201_v46, 1  ;;  %v207_v55 = vadd.f32 %v206_v47, %v205_v40 }
  0x1e   :  { %v138_v56 = vsel %vm46_vm0, %v135_v49, %v129_v48  ;;  %v153_v57 = vadd.f32 %v152_v50, %v151_v6  ;;  %v185_v58 = vadd.f32 %v184_v51, %v183_v43  ;;  %v176_v59 = vmul.f32 %v316_v62, %v316_v62 }
  0x1f   :  { %245 = vst [vmem:[%s379_s3 + $0x8] sm:$0x3] %v138_v56  ;;  %v191_v60 = vadd.f32 %v190_v53, %v189_v45  ;;  %v203_v61 = vadd.f32 %v202_v54, %v201_v46  ;;  %v208_v63 = vrot.slane %v207_v55, 1  ;;  %v177_v0 = vmul.f32 %v325_v7, %v325_v7 }
  0x20   :  { %v156_v1 = vsel %vm46_vm0, %v153_v57, %v147_v52  ;;  %v216_v4 = vrot.slane %v176_v59, 4 }
  0x21   :  { %246 = vst [vmem:[%s379_s3 + $0xa] sm:$0x3] %v156_v1  ;;  %v194_v8 = vsel %vm46_vm0, %v191_v60, %v185_v58  ;;  %v209_v62 = vadd.f32 %v208_v63, %v207_v55  ;;  %v222_v9 = vrot.slane %v177_v0, 4 }
  0x22   :  { %249 = vst [vmem:[%s379_s3 + $0xc] sm:$0x3] %v194_v8  ;;  %v217_v10 = vadd.f32 %v216_v4, %v176_v59 }
  0x23   :  { %v212_v11 = vsel %vm46_vm0, %v209_v62, %v203_v61  ;;  %v223_v14 = vadd.f32 %v222_v9, %v177_v0 }
  0x24   :  { %250 = vst [vmem:[%s379_s3 + $0xe] sm:$0x3] %v212_v11  ;;  %v218_v7 = vrot.slane %v217_v10, 2 }
  0x25   :  { %v224_v15 = vrot.slane %v223_v14, 2 }
  0x26   :  { %v219_v16 = vadd.f32 %v218_v7, %v217_v10 }
  0x27   :  { %v225_v17 = vadd.f32 %v224_v15, %v223_v14 }
  0x28   :  { %v220_v18 = vrot.slane %v219_v16, 1 }
  0x29   :  { %v226_v19 = vrot.slane %v225_v17, 1 }
  0x2a   :  { %v221_v12 = vadd.f32 %v220_v18, %v219_v16 }
  0x2b   :  { %v227_v20 = vadd.f32 %v226_v19, %v225_v17 }
  0x2d   :  { %v230_v13 = vsel %vm46_vm0, %v227_v20, %v221_v12 }
  0x2e   :  { %251 = vst [vmem:[%s379_s3 + $0x10] sm:$0x3] %v230_v13 }

</bundles_post_ra>
